<compile_context>
chip_gen: v7x
topology: tpu7x:2x2x1
jax: 0.10.0
libtpu: 0.0.40
codegen_flags: <defaults>
</compile_context>

<pallas_src>
import functools

import jax
import jax.numpy as jnp
from jax import lax
from jax.experimental import pallas as pl
from jax.experimental.pallas import tpu as pltpu

EPS = 1e-5
LANE = 128


def _round_up(x, m):
    return (x + m - 1) // m * m


def _vmem_limit(block_bytes):
    # Explicit scoped-VMEM request: double-buffered blocks + headroom,
    # clamped to [default 32 MiB, v7x-safe 64 MiB].
    return int(min(max(2 * block_bytes + (8 << 20), 32 << 20), 64 << 20))


# ----------------------------- Pallas kernels ------------------------------ #

def _conv3x3_bn_kernel(x_ref, w_ref, shift_ref, o_ref, *, hh, ww, relu):
    """Fused 3x3 / stride-1 conv + BN shift (+ReLU) for one image.

    x_ref:     (1, hh+2, ww+2, C)  spatially padded activation, bf16
    w_ref:     (9, C, Cp)          BN-scale-folded weights, bf16
    shift_ref: (1, Cp)             BN shift, f32
    o_ref:     (1, hh, ww, Cp)     bf16
    """
    cp = o_ref.shape[-1]
    acc = jnp.zeros((hh * ww, cp), jnp.float32)
    for dy in range(3):
        for dx in range(3):
            patch = x_ref[0, dy:dy + hh, dx:dx + ww, :]        # (hh, ww, C)
            patch = patch.reshape(hh * ww, patch.shape[-1])
            acc = acc + jnp.dot(patch, w_ref[dy * 3 + dx],
                                preferred_element_type=jnp.float32)
    y = acc + shift_ref[...]
    if relu:
        y = jnp.maximum(y, 0.0)
    o_ref[0] = y.reshape(hh, ww, cp).astype(o_ref.dtype)


def _conv3x3_bn_res_kernel(x_ref, w_ref, shift_ref, r_ref, o_ref, *, hh, ww):
    """Last layer: 3x3 conv + BN shift + residual add + ReLU, fully fused."""
    cp = o_ref.shape[-1]
    acc = jnp.zeros((hh * ww, cp), jnp.float32)
    for dy in range(3):
        for dx in range(3):
            patch = x_ref[0, dy:dy + hh, dx:dx + ww, :]
            patch = patch.reshape(hh * ww, patch.shape[-1])
            acc = acc + jnp.dot(patch, w_ref[dy * 3 + dx],
                                preferred_element_type=jnp.float32)
    res = r_ref[0].reshape(hh * ww, cp).astype(jnp.float32)
    y = jnp.maximum(acc + shift_ref[...] + res, 0.0)
    o_ref[0] = y.reshape(hh, ww, cp).astype(o_ref.dtype)


def _mm_bn_kernel(p_ref, w_ref, shift_ref, o_ref, *, relu):
    """(bm, K) @ (K, Cp) + BN shift (+ReLU). Used for stride-2 conv and skip."""
    acc = jnp.dot(p_ref[...], w_ref[...], preferred_element_type=jnp.float32)
    y = acc + shift_ref[...]
    if relu:
        y = jnp.maximum(y, 0.0)
    o_ref[...] = y.astype(o_ref.dtype)


# ------------------------------ kernel wrappers ----------------------------- #

def conv3x3_bn(x_pad, w9, shift, *, relu, residual=None):
    """x_pad: (N, H+2, W+2, C) bf16; w9: (9, C, Cp) bf16; shift: (1, Cp) f32.
    residual: optional (N, H, W, Cp) bf16. Returns (N, H, W, Cp) bf16."""
    n, hp2, wp2, c = x_pad.shape
    hh, ww = hp2 - 2, wp2 - 2
    cp = w9.shape[-1]

    x_spec = pl.BlockSpec((1, hp2, wp2, c), lambda b: (b, 0, 0, 0))
    w_spec = pl.BlockSpec((9, c, cp), lambda b: (0, 0, 0))
    s_spec = pl.BlockSpec((1, cp), lambda b: (0, 0))
    o_spec = pl.BlockSpec((1, hh, ww, cp), lambda b: (b, 0, 0, 0))

    res_bytes = hh * ww * cp * 2 if residual is not None else 0
    block_bytes = (hp2 * wp2 * c * 2 + 9 * c * cp * 2 + cp * 4
                   + hh * ww * cp * 2 + res_bytes)
    bytes_accessed = int(x_pad.size * 2 + w9.size * 2 + shift.size * 4
                         + n * hh * ww * cp * 2 + n * res_bytes)
    cost = pl.CostEstimate(flops=2 * n * hh * ww * 9 * c * cp,
                           transcendentals=0, bytes_accessed=bytes_accessed)
    params = pltpu.CompilerParams(dimension_semantics=("parallel",),
                                  vmem_limit_bytes=_vmem_limit(block_bytes))
    out_shape = jax.ShapeDtypeStruct((n, hh, ww, cp), jnp.bfloat16)

    if residual is None:
        kern = functools.partial(_conv3x3_bn_kernel, hh=hh, ww=ww, relu=relu)
        return pl.pallas_call(
            kern, out_shape=out_shape, grid=(n,),
            in_specs=[x_spec, w_spec, s_spec], out_specs=o_spec,
            compiler_params=params, cost_estimate=cost,
        )(x_pad, w9, shift)

    kern = functools.partial(_conv3x3_bn_res_kernel, hh=hh, ww=ww)
    r_spec = pl.BlockSpec((1, hh, ww, cp), lambda b: (b, 0, 0, 0))
    return pl.pallas_call(
        kern, out_shape=out_shape, grid=(n,),
        in_specs=[x_spec, w_spec, s_spec, r_spec], out_specs=o_spec,
        compiler_params=params, cost_estimate=cost,
    )(x_pad, w9, shift, residual)


def matmul_bn(patches, w_mat, shift, *, relu):
    """patches: (M, K) bf16; w_mat: (K, Cp) bf16 (scale folded); shift (1, Cp)."""
    m, k = patches.shape
    cp = w_mat.shape[1]
    # Largest M tile <= 512, multiple of 8, >= 2 grid steps when M allows it.
    bm = min(512, _round_up(max(8, -(-m // 2)), 8))
    pm = _round_up(m, bm)
    if pm != m:
        patches = jnp.pad(patches, ((0, pm - m), (0, 0)))

    block_bytes = bm * k * 2 + k * cp * 2 + cp * 4 + bm * cp * 2
    cost = pl.CostEstimate(
        flops=2 * pm * k * cp, transcendentals=0,
        bytes_accessed=int(pm * k * 2 + k * cp * 2 + cp * 4 + pm * cp * 2))
    params = pltpu.CompilerParams(dimension_semantics=("parallel",),
                                  vmem_limit_bytes=_vmem_limit(block_bytes))

    out = pl.pallas_call(
        functools.partial(_mm_bn_kernel, relu=relu),
        out_shape=jax.ShapeDtypeStruct((pm, cp), jnp.bfloat16),
        grid=(pm // bm,),
        in_specs=[pl.BlockSpec((bm, k), lambda i: (i, 0)),
                  pl.BlockSpec((k, cp), lambda i: (0, 0)),
                  pl.BlockSpec((1, cp), lambda i: (0, 0))],
        out_specs=pl.BlockSpec((bm, cp), lambda i: (i, 0)),
        compiler_params=params, cost_estimate=cost,
    )(patches, w_mat, shift)
    return out[:m] if pm != m else out


# ------------------------------ parameter prep ------------------------------ #

def fold_bn(gamma, beta, mean, var):
    scale = gamma / jnp.sqrt(var + EPS)
    shift = beta - mean * scale
    return scale, shift


def prep_conv3x3(w_oihw, gamma, beta, mean, var, cin_pad, cout_pad):
    """-> (9, cin_pad, cout_pad) bf16 scale-folded weight, (1, cout_pad) f32."""
    scale, shift = fold_bn(gamma, beta, mean, var)
    w = jnp.transpose(w_oihw, (2, 3, 1, 0)) * scale          # (3,3,Cin,Cout)
    cin, cout = w.shape[2], w.shape[3]
    w = jnp.pad(w, ((0, 0), (0, 0), (0, cin_pad - cin), (0, cout_pad - cout)))
    w9 = w.reshape(9, cin_pad, cout_pad).astype(jnp.bfloat16)
    shift_p = jnp.pad(shift, (0, cout_pad - cout)).reshape(1, cout_pad)
    return w9, shift_p.astype(jnp.float32)


def prep_conv3x3_mat(w_oihw, gamma, beta, mean, var, cout_pad):
    """im2col form: -> (9*Cin, cout_pad) bf16, (1, cout_pad) f32."""
    scale, shift = fold_bn(gamma, beta, mean, var)
    cout = w_oihw.shape[0]
    w = (jnp.transpose(w_oihw, (2, 3, 1, 0)) * scale).reshape(-1, cout)
    w = jnp.pad(w, ((0, 0), (0, cout_pad - cout))).astype(jnp.bfloat16)
    shift_p = jnp.pad(shift, (0, cout_pad - cout)).reshape(1, cout_pad)
    return w, shift_p.astype(jnp.float32)


def prep_conv1x1_mat(w_oihw, gamma, beta, mean, var, cout_pad):
    scale, shift = fold_bn(gamma, beta, mean, var)
    cout, cin = w_oihw.shape[0], w_oihw.shape[1]
    w = w_oihw.reshape(cout, cin).T * scale                   # (Cin, Cout)
    w = jnp.pad(w, ((0, 0), (0, cout_pad - cout))).astype(jnp.bfloat16)
    shift_p = jnp.pad(shift, (0, cout_pad - cout)).reshape(1, cout_pad)
    return w, shift_p.astype(jnp.float32)


def im2col(x_nhwc, kh, kw, stride, pad):
    """Patch gather (kept only for the stride-2 first conv), bf16."""
    n, h, w, c = x_nhwc.shape
    ho = (h + 2 * pad - kh) // stride + 1
    wo = (w + 2 * pad - kw) // stride + 1
    xp = jnp.pad(x_nhwc, ((0, 0), (pad, pad), (pad, pad), (0, 0)))
    cols = []
    for dy in range(kh):
        for dx in range(kw):
            cols.append(xp[:, dy:dy + stride * ho:stride,
                           dx:dx + stride * wo:stride, :])
    patches = jnp.concatenate(cols, axis=-1)                  # (N,Ho,Wo,9C)
    return patches.reshape(n * ho * wo, kh * kw * c), (n, ho, wo)


# ------------------------------ block forward ------------------------------- #

def make_params(key, n, in_channels, out_channels, downsample):
    num_layers = 2 * n
    params = {"layers": [], "skip": None}
    keys = jax.random.split(key, 5 * num_layers + 5)
    ki = 0

    def bn_init():
        nonlocal ki
        gamma = 1.0 + 0.1 * jax.random.normal(keys[ki], (out_channels,)); ki += 1
        beta = 0.1 * jax.random.normal(keys[ki], (out_channels,)); ki += 1
        mean = 0.1 * jax.random.normal(keys[ki], (out_channels,)); ki += 1
        var = jax.random.uniform(keys[ki], (out_channels,), minval=0.5,
                                 maxval=1.5); ki += 1
        return gamma, beta, mean, var

    for li in range(num_layers):
        cin = in_channels if li == 0 else out_channels
        stride = 2 if (li == 0 and downsample) else 1
        relu = li != num_layers - 1
        fan_in = cin * 9
        w = jax.random.normal(keys[ki], (out_channels, cin, 3, 3)) * (
            2.0 / fan_in) ** 0.5
        ki += 1
        gamma, beta, mean, var = bn_init()
        params["layers"].append(dict(w=w, gamma=gamma, beta=beta, mean=mean,
                                     var=var, stride=stride, relu=relu))

    if downsample:
        w = jax.random.normal(keys[ki], (out_channels, in_channels, 1, 1)) * (
            2.0 / in_channels) ** 0.5
        ki += 1
        gamma, beta, mean, var = bn_init()
        params["skip"] = dict(w=w, gamma=gamma, beta=beta, mean=mean, var=var)
    return params


def residual_block_forward(x_nchw, params, downsample):
    x = jnp.transpose(x_nchw, (0, 2, 3, 1)).astype(jnp.bfloat16)  # NHWC bf16
    n, h, w, cin = x.shape
    layers = params["layers"]
    cout = layers[0]["w"].shape[0]
    cp = _round_up(cout, LANE)                 # lane-dense padded channel count

    stride0 = layers[0]["stride"]
    ho, wo = h // stride0, w // stride0

    # ---- skip path -> (N, Ho, Wo, Cp), extra channels are zero ----
    if downsample:
        sp = params["skip"]
        xs = x[:, ::2, ::2, :]                                 # 1x1 / stride-2
        w_mat, shift = prep_conv1x1_mat(sp["w"], sp["gamma"], sp["beta"],
                                        sp["mean"], sp["var"], cp)
        res = matmul_bn(xs.reshape(n * ho * wo, cin), w_mat, shift, relu=False)
        residual = res.reshape(n, ho, wo, cp)
    else:
        residual = jnp.pad(x, ((0, 0), (0, 0), (0, 0), (0, cp - cin)))

    # ---- layer 0 (possibly strided) ----
    lp = layers[0]
    if lp["stride"] == 2:
        # TODO(synk): the stride-2 first conv still uses a (bf16) JAX-side
        # im2col; a 4-phase in-kernel gather would remove this HBM round trip.
        patches, _ = im2col(x, 3, 3, stride=2, pad=1)
        w_mat, shift = prep_conv3x3_mat(lp["w"], lp["gamma"], lp["beta"],
                                        lp["mean"], lp["var"], cp)
        cur = matmul_bn(patches, w_mat, shift, relu=True).reshape(n, ho, wo, cp)
    else:
        w9, shift = prep_conv3x3(lp["w"], lp["gamma"], lp["beta"], lp["mean"],
                                 lp["var"], cin, cp)
        x_pad = jnp.pad(x, ((0, 0), (1, 1), (1, 1), (0, 0)))
        cur = conv3x3_bn(x_pad, w9, shift, relu=True)

    # ---- layers 1 .. last: fused in-kernel-patch 3x3 convs ----
    for li in range(1, len(layers)):
        lp = layers[li]
        w9, shift = prep_conv3x3(lp["w"], lp["gamma"], lp["beta"], lp["mean"],
                                 lp["var"], cp, cp)
        x_pad = jnp.pad(cur, ((0, 0), (1, 1), (1, 1), (0, 0)))
        if li < len(layers) - 1:
            cur = conv3x3_bn(x_pad, w9, shift, relu=True)
        else:
            cur = conv3x3_bn(x_pad, w9, shift, relu=False, residual=residual)

    out = cur[..., :cout]                                      # drop lane pad
    return jnp.transpose(out, (0, 3, 1, 2)).astype(jnp.float32)  # NCHW


# --------------------------- pure-JAX f32 reference ------------------------- #

def _ref_conv(x_nhwc, w_oihw, stride, pad):
    w_hwio = jnp.transpose(w_oihw, (2, 3, 1, 0))
    return lax.conv_general_dilated(
        x_nhwc, w_hwio, (stride, stride), ((pad, pad), (pad, pad)),
        dimension_numbers=("NHWC", "HWIO", "NHWC"))


def residual_block_ref(x_nchw, params, downsample):
    x = jnp.transpose(x_nchw, (0, 2, 3, 1)).astype(jnp.float32)
    if downsample:
        sp = params["skip"]
        scale, shift = fold_bn(sp["gamma"], sp["beta"], sp["mean"], sp["var"])
        residual = _ref_conv(x, sp["w"], 2, 0) * scale + shift
    else:
        residual = x
    cur = x
    for lp in params["layers"]:
        scale, shift = fold_bn(lp["gamma"], lp["beta"], lp["mean"], lp["var"])
        cur = _ref_conv(cur, lp["w"], lp["stride"], 1) * scale + shift
        if lp["relu"]:
            cur = jnp.maximum(cur, 0.0)
    out = jnp.maximum(cur + residual, 0.0)
    return jnp.transpose(out, (0, 3, 1, 2))


# --------------------------------- main ------------------------------------- #

if __name__ == "__main__":
    key = jax.random.PRNGKey(0)
    k_x, k_p = jax.random.split(key)

    n_blocks = 2          # ResidualBlock(n=2) -> 4 conv layers in the block
    in_channels = 4
    out_channels = 8
    downsample = True
    x = jax.random.normal(k_x, (2, in_channels, 16, 16), dtype=jnp.float32)

    params = make_params(k_p, n_blocks, in_channels, out_channels, downsample)

    out = residual_block_forward(x, params, downsample)
    out = jax.block_until_ready(out)

    ref = jax.block_until_ready(residual_block_ref(x, params, downsample))
    assert out.shape == ref.shape == (2, out_channels, 8, 8), out.shape
    # bf16 activations/weights (f32 accumulation) vs. f32 reference.
    assert jnp.allclose(out, ref, rtol=5e-2, atol=5e-2), float(
        jnp.max(jnp.abs(out - ref)))

    print("KERNEL_OK")
</pallas_src>

<mosaic_0001>
module attributes {stable_mosaic.version = 11 : i64} {
  func.func @_mm_bn_kernel(%arg0: i32, %arg1: memref<64x4xbf16, #tpu.memory_space<vmem>>, %arg2: memref<4x128xbf16, #tpu.memory_space<vmem>>, %arg3: memref<1x128xf32, #tpu.memory_space<vmem>>, %arg4: memref<64x128xbf16, #tpu.memory_space<vmem>>) attributes {dimension_semantics = [#tpu.dimension_semantics<parallel>], iteration_bounds = array<i64: 2>, scalar_prefetch = 0 : i64, scratch_operands = 0 : i64, tpu.core_type = #tpu.core_type<tc>, window_params = [{transform_indices = @transform_0, window_bounds = array<i64: 64, 4>}, {pipeline_mode = #tpu.pipeline_mode<synchronous>, transform_indices = @transform_1, window_bounds = array<i64: 4, 128>}, {pipeline_mode = #tpu.pipeline_mode<synchronous>, transform_indices = @transform_2, window_bounds = array<i64: 1, 128>}, {transform_indices = @transform_3, window_bounds = array<i64: 64, 128>}]} {
    %c0 = arith.constant 0 : index
    %c0_0 = arith.constant 0 : index
    %0 = vector.load %arg1[%c0, %c0_0] : memref<64x4xbf16, #tpu.memory_space<vmem>>, vector<64x4xbf16>
    %c0_1 = arith.constant 0 : index
    %c0_2 = arith.constant 0 : index
    %1 = vector.load %arg2[%c0_1, %c0_2] : memref<4x128xbf16, #tpu.memory_space<vmem>>, vector<4x128xbf16>
    %cst = arith.constant dense<0.000000e+00> : vector<64x128xf32>
    %2 = tpu.matmul %0, %1, %cst {dimension_numbers = #tpu.dot_dimension_numbers<[1], [0], [0], [1], [0, 0, 1, 1], [], []>} : vector<64x4xbf16>, vector<4x128xbf16>, vector<64x128xf32> -> vector<64x128xf32>
    %c0_3 = arith.constant 0 : index
    %c0_4 = arith.constant 0 : index
    %3 = vector.load %arg3[%c0_3, %c0_4] : memref<1x128xf32, #tpu.memory_space<vmem>>, vector<1x128xf32>
    %4 = vector.broadcast %3 : vector<1x128xf32> to vector<64x128xf32>
    %5 = arith.addf %2, %4 : vector<64x128xf32>
    %6 = arith.truncf %5 : vector<64x128xf32> to vector<64x128xbf16>
    %c0_5 = arith.constant 0 : index
    %c0_6 = arith.constant 0 : index
    %7 = vector.load %arg4[%c0_5, %c0_6] : memref<64x128xbf16, #tpu.memory_space<vmem>>, vector<64x128xbf16>
    tpu.vector_store %arg4[%c0_5, %c0_6], %6 {strides = array<i32>} : memref<64x128xbf16, #tpu.memory_space<vmem>>, vector<64x128xbf16>,
    return
  }
  func.func @transform_0(%arg0: i32) -> (i32, i32) {
    %c0_i32 = arith.constant 0 : i32
    %c0_i32_0 = arith.constant 0 : i32
    return %arg0, %c0_i32 : i32, i32
  }
  func.func @transform_1(%arg0: i32) -> (i32, i32) {
    %c0_i32 = arith.constant 0 : i32
    %c0_i32_0 = arith.constant 0 : i32
    %c0_i32_1 = arith.constant 0 : i32
    return %c0_i32, %c0_i32_0 : i32, i32
  }
  func.func @transform_2(%arg0: i32) -> (i32, i32) {
    %c0_i32 = arith.constant 0 : i32
    %c0_i32_0 = arith.constant 0 : i32
    %c0_i32_1 = arith.constant 0 : i32
    return %c0_i32, %c0_i32_0 : i32, i32
  }
  func.func @transform_3(%arg0: i32) -> (i32, i32) {
    %c0_i32 = arith.constant 0 : i32
    %c0_i32_0 = arith.constant 0 : i32
    return %arg0, %c0_i32 : i32, i32
  }
}

</mosaic_0001>

<bundles_post_ra>
// kernel: tpu_custom_call.1
= control target key start
LH: loop header
LB: loop body
LE: loop exit
PB: predicated region body
PF: predicated region fallthrough
CT: control target
= control target key end

     0   :  { %8 = vsyncpa [#allocation3], 0  ;;  %s731_s0 = inlined_call_operand.vmem [shape: bf16[128,4], index: 0, kind: input, shape index: {}]   ;;  %s732_s1 = inlined_call_operand.vmem [shape: bf16[4,128], index: 1, kind: input, shape index: {}]   ;;  %s733_s2 = inlined_call_operand.vmem [shape: f32[1,128], index: 2, kind: input, shape index: {}]   ;;  %s734_s3 = inlined_call_operand.hbm [shape: bf16[128,128], index: 3, kind: output, shape index: {}]  }
   0x1   :  { %10 = vsyncpa [#allocation3 + $0x1], 0  ;;  %s619_s12 = smov 0   ;;  %s621_s13 = smov 0  }
   0x2   :  { %s623_s14 = smov 0   ;;  %s625_s15 = smov 0  }
   0x3 LB: > { %s640_s16 = sadd.s32 4294967295, %s594_s15   ;;  %s407_s17 = sadd.s32 4294967294, %s594_s15   ;;  %s594_s15 = sphi %s625_s15, %s740_s15   ;;  %s590_s14 = sphi %s623_s14, %s739_s14   ;;  %s586_s13 = sphi %s621_s13, %s738_s13   ;;  %s582_s12 = sphi %s619_s12, %s737_s12  }
   0x4   : > { %s644_s18 = sadd.s32 1, %s594_s15   ;;  %s91_s19 = sadd.s32 1, %s590_s14 }
   0x5   : > { %s88_s20 = ssub.s32 %s594_s15, %s644_s18  ;;  %p101_p0 = scmp.ne.s32.totalorder %s590_s14, %s586_s13 }
   0x6   : > { %p89_p1 = scmp.eq.s32.totalorder %s88_s20, 0  ;;  %p102_p2 = scmp.eq.s32.totalorder %s640_s16, 1 }
   0x7   : > { %p107_p3 = scmp.ne.s32.totalorder %s586_s13, %s582_s12  ;;  %p108_p4 = scmp.eq.s32.totalorder %s407_s17, 1 }
   0x8   : > { %s655_s21 = scalar_select %p89_p1, %s590_s14, %s91_s19  }
   0x9   : > { %p657_p5 = por %p102_p2, %p101_p0  ;;  %p661_p6 = por %p108_p4, %p107_p3 }
   0xa   : > { %p410_p7 = scmp.ge.s32.totalorder %s594_s15, 1  ;;  %p141_p8 = scmp.lt.s32.totalorder %s594_s15, 3 }
   0xc   : > { %p142_p9 = pnand %p410_p7, %p141_p8 }
   0xd   : > { %v181_v0 = vld [vmem:[%s732_s1] sm:$0x3] (!%p142_p9)  ;;  %vm222_vm0 = vcmask (!%p142_p9), 1041408   ;;  %s412_s26 = sshll.u32 (!%p142_p9), %s640_s16, 3  ;;  %vm209_vm1 = vcmask (!%p142_p9), 31744   ;;  %s162_s4 = sand.u32 (!%p142_p9), 1, %s586_s13  }
   0xe   : > { %145 = sbr.rel (%p142_p9) target bundleno = 260 (0x104), region = 32  ;;  %485 = vmatprep.subr.msk.bf16.mxu0 (!%p142_p9), %vm222_vm0, %v181_v0  ;;  %486 = vmatprep.subr.msk.bf16.mxu1 (!%p142_p9), %vm222_vm0, %v181_v0  ;;  %v224_v1 = vsel (!%p142_p9), %vm222_vm0, %v181_v0, 0  ;;  %p166_p10 = scmp.lt.s32.totalorder (!%p142_p9), %s412_s26, 15  ;;  %v414_v7 = vld [vmem:[%s733_s2] ss:$0 sm:$0xff] (!%p142_p9) }
   0xf   : > { %474 = vmatpush3.bf16.msra.mxu0 (!%p142_p9), %v224_v1  ;;  %484 = vmatpush3.bf16.msra.mxu1 (!%p142_p9), %v224_v1  ;;  %s411_s5 = sshll.u32 (!%p142_p9), %s162_s4, 5  ;;  %s444_s10 = sshll.u32 (!%p142_p9), %s640_s16, 9 }
  0x10   : > { %s164_s8 = scalar_lea.vmem (!%p142_p9), [#allocation2], %s411_s5  ;;  %s686_s16 = scalar_lea.hbm (!%p142_p9), %s734_s3, %s444_s10 }
  0x11   : > { %s345_s9 = sshll.u32 (!%p142_p9), %s164_s8, 4  ;;  %s690_s19 = scalar_lea.sflag (!%p142_p9), [#allocation3], %s162_s4  ;;  %s681_s9 = int_to_ptr.vmem [resolvable:$true] %s345_s9 }
  0x12   : > { %s532_s20 = scalar_lea.vmem (!%p142_p9), %s681_s9, 512  ;;  %s596_s24 = smov (!%p142_p9), [#allocation2]  }
  0x13   : > { %p533_p11 = scmp.ne.s32.totalorder (!%p142_p9), %s681_s9, %s532_s20  ;;  %s536_s25 = sshll.u32 (!%p142_p9), %s596_s24, 4  ;;  %s537_s25 = int_to_ptr.vmem [resolvable:$false] %s536_s25 }
  0x14   : > { %p539_p0 = scmp.lt.s32.totalorder (!%p142_p9), %s681_s9, %s537_s25 }
  0x15   : > { %s742_s26 = smov (!%p166_p10, %s412_s26), 15  ;;  %p534_p12 = pnand %p533_p11, %p657_p5 }
  0x16   : > { %s413_s27 = sshll.u32 %s742_s26, 2  ;;  %s538_s26 = scalar_lea.vmem %s537_s25, 1024 }
  0x17   : > { %s169_s30 = scalar_lea.vmem %s731_s0, %s413_s27  ;;  %p535_p13 = pneg %p534_p12 }
  0x18   : > { %v528_v2 = vld [vmem:[%s169_s30] sm:$0xff]   ;;  %v529_v3 = vld [vmem:[%s169_s30 + $0x10] sm:$0xff]   ;;  %v530_v4 = vld [vmem:[%s169_s30 + $0x8] sm:$0xff]   ;;  %p540_p1 = scmp.lt.s32.totalorder %s538_s26, %s532_s20 }
  0x19   : > { %475 = vmatprep.mubr.msk.bf16.mxu0 %vm209_vm1, %v528_v2  ;;  %479 = vmatprep.mubr.msk.bf16.mxu1 %vm209_vm1, %v529_v3  ;;  %v531_v5 = vld [vmem:[%s169_s30 + $0x18] sm:$0xff]  }
  0x1a   : > { %476 = vmatmul.mubr.msk.bf16.vlgmr.msra.gmra.mrb[0].mxu0 %vm209_vm1, %v530_v4  ;;  %480 = vmatmul.mubr.msk.bf16.vlgmr.msra.gmra.mrb[0].mxu1 %vm209_vm1, %v531_v5  ;;  %p541_p2 = por %p540_p1, %p539_p0 }
  0x1c   : > { %p542_p3 = pnand %p541_p2, %p535_p13 }
  0xed   : > { %v477_v6 = vpop.f32.mrb[0].mxu0  ;;  %v481_v8 = vpop.f32.mrb[0].mxu1 }
  0xee   : > { %v260_v9 = vpop.f32.mrb[1].mxu0  ;;  %v276_v10 = vpop.f32.mrb[1].mxu1  ;;  %v269_v12 = vadd.f32 %v477_v6, %v414_v7  ;;  %v285_v16 = vadd.f32 %v481_v8, %v414_v7 }
  0xef   : > { %v478_v11 = vpop.f32.mrb[2].mxu0  ;;  %v482_v14 = vpop.f32.mrb[2].mxu1  ;;  %v261_v17 = vadd.f32 %v414_v7, %v260_v9  ;;  %v277_v21 = vadd.f32 %v414_v7, %v276_v10 }
  0xf0   : > { %v272_v13 = vadd.f32 %v478_v11, %v414_v7  ;;  %v263_v15 = vpop.f32.mrb[3].mxu0  ;;  %v288_v18 = vadd.f32 %v482_v14, %v414_v7  ;;  %v279_v20 = vpop.f32.mrb[3].mxu1 }
  0xf1   : > { %v264_v19 = vadd.f32 %v414_v7, %v263_v15  ;;  %v280_v23 = vadd.f32 %v414_v7, %v279_v20 }
  0xf2   : > { %v453_v22 = vpack.c.bf16 %v272_v13, %v269_v12  ;;  %v463_v24 = vpack.c.bf16 %v288_v18, %v285_v16 }
  0xf3   : > { %v448_v25 = vpack.c.bf16 %v264_v19, %v261_v17  ;;  %v458_v26 = vpack.c.bf16 %v280_v23, %v277_v21 }
  0xf4   : > { %465 = vst [vmem:[%s164_s8 + $0x8] sm:$0xff] %v453_v22   ;;  %467 = vst [vmem:[%s164_s8 + $0x18] sm:$0xff] %v463_v24  }
  0xf5   : > { %449 = vst [vmem:[%s164_s8] sm:$0xff] %v448_v25   ;;  %466 = vst [vmem:[%s164_s8 + $0x10] sm:$0xff] %v458_v26  }
  0xf6   : > { %545 = shalt.err (!%p542_p3)
}
  0xf7   : > { %s546_s27 = scalar_lea.hbm %s686_s16, 512  ;;  %s550_s30 = scalar_lea.hbm %s734_s3, 1024 }
  0xf8   : > { %p547_p4 = scmp.ne.s32.totalorder %s686_s16, %s546_s27  ;;  %p551_p9 = scmp.lt.u32.totalorder %s686_s16, %s734_s3 }
  0xf9   : > { %p552_p10 = scmp.lt.u32.totalorder %s550_s30, %s546_s27  ;;  %p554_p12 = scmp.lt.u32.totalorder %s546_s27, %s686_s16 }
  0xfa   : > { %p548_p7 = pnand %p547_p4, %p657_p5 }
  0xfb   : > { %p553_p11 = por %p552_p10, %p551_p9 }
  0xfc   : > { %p549_p8 = pneg %p548_p7 }
  0xfd   : > { %p555_p13 = por %p554_p12, %p553_p11 }
  0xff   : > { %p556_p0 = pnand %p555_p13, %p549_p8 }
 0x101   : > { %559 = shalt.err (!%p556_p0)
}
 0x102   : > { %s597_s6 = smov 64   ;;  %s598_s7 = smov 4  }
 0x103   : > { %487 = dma.vmem_to_hbm [thread:$0]  (%p657_p5), %s681_s9, 512, %s686_s16, %s690_s19, %s597_s6, %s597_s6, %s598_s7  }
 0x104 PF: > { %p493_p1 = scmp.ge.s32.totalorder %s594_s15, 2  ;;  %s360_s8 = sand.u32 1, %s582_s12  }
 0x105   : > { %s361_s10 = scalar_lea.sflag [#allocation3], %s360_s8 }
 0x106   : > { %p490_p2 = pnand %p493_p1, %p661_p6 }
 0x108   : > { %577 = dma.done.wait (!%p490_p2), %s361_s10, 512  }
 0x109   : > { %579 = vsyncadd (!%p490_p2), %s361_s10, 4294966784  ;;  %p13_p3 = scmp.ge.s32.totalorder %s644_s18, 4   ;;  %s737_s12 = smov %s586_s13 }
 0x10a   : > { %s738_s13 = smov %s590_s14  ;;  %s739_s14 = smov %s655_s21 }
 0x10b   : > { %s740_s15 = smov %s644_s18  ;;  %15 = sbr.rel (!%p13_p3) target bundleno = 3 (0x3), region = 67 }
 0x112   :  { %366 = vsyncpa [#allocation3], 1 }
 0x113   :  { %368 = vsyncpa [#allocation3 + $0x1], 1 }

</bundles_post_ra>
